<compile_context>
chip_gen: v7x
topology: tpu7x:2x2x1
jax: 0.10.0
libtpu: 0.0.40
codegen_flags: <defaults>
</compile_context>

<pallas_src>
import functools

import jax
import jax.numpy as jnp
from jax import lax
from jax.experimental import pallas as pl
from jax.experimental.pallas import tpu as pltpu


def _attention_context_kernel(enc_ref, dec_ref, wt_ref, ut_ref, bias_ref, v_ref,
                              out_ref, *, seq_len):
    bt, s_pad, h2 = enc_ref.shape
    h = ut_ref.shape[-1]

    enc = enc_ref[...]                                    # (Bt, S_pad, 2H) bf16
    dec = dec_ref[...]                                    # (Bt, H)        bf16

    # U(encoder_annotations): one big MXU pass over the collapsed LHS.
    # S_pad % 8 == 0 makes the (Bt, S_pad, 2H) -> (Bt*S_pad, 2H) collapse
    # layout-free (whole sublane tiles per batch row).
    enc2d = enc.reshape(bt * s_pad, h2)
    ue = jnp.dot(enc2d, ut_ref[...], preferred_element_type=jnp.float32)
    ue = ue.reshape(bt, s_pad, h)                         # (Bt, S_pad, H) f32

    # W(decoder_prev_hidden) + (W_b + U_b): one (Bt,H)@(H,H) matmul + fused bias
    # added on the small (Bt,H) tensor (saves a (Bt,S_pad,H) VPU add).
    wd = jnp.dot(dec, wt_ref[...], preferred_element_type=jnp.float32)
    wd = wd + bias_ref[...]                               # (Bt, H) f32

    act = jnp.tanh(ue + wd[:, None, :])                   # (Bt, S_pad, H) f32

    # V projection (output width 1): VPU multiply + lane reduce (avoid N=1 matmul).
    scores = jnp.sum(act * v_ref[...], axis=-1)           # (Bt, S_pad) f32

    if s_pad != seq_len:                                  # mask sequence padding
        pos = lax.broadcasted_iota(jnp.int32, (bt, s_pad), 1)
        scores = jnp.where(pos < seq_len, scores, jnp.float32(-1e30))

    # Softmax over the sequence axis (f32, max-subtracted).
    m = jnp.max(scores, axis=1, keepdims=True)            # (Bt, 1)
    e = jnp.exp(scores - m)                               # (Bt, S_pad)
    w = e * pl.reciprocal(jnp.sum(e, axis=1, keepdims=True), approx=True)

    # context = weights @ encoder_annotations -> (Bt, 2H), lane-dense store.
    context = jnp.sum(w[:, :, None] * enc.astype(jnp.float32), axis=1)
    out_ref[...] = context.astype(out_ref.dtype)


def _pick_bt(B, S_pad):
    """Batch rows per grid step: target ~256 collapsed (Bt*S_pad) MXU rows.

    Keeps the sublane dim of the 2-D dec/out blocks either a multiple of 8 or
    the full batch, and leaves >= 2 grid steps for larger batches (v7x 2 TCs)."""
    bt = max(1, 256 // max(S_pad, 1))
    if bt >= B:
        return B
    bt = max(8, (bt // 8) * 8)
    return min(bt, B)


@functools.partial(jax.jit, static_argnames=("bt",))
def attention_context_forward(encoder_annotations, decoder_prev_hidden, params, *, bt=None):
    """encoder_annotations: (B, S, 2H) f32
       decoder_prev_hidden: (1, B, H) f32   (PyTorch layout)
    returns context: (B, 1, 2H) f32"""
    W_w, W_b, U_w, U_b, V_w, V_b = params
    B, S, H2 = encoder_annotations.shape
    H = H2 // 2

    # Glue outside the kernel: layout permute, weight transposition, dtype casts.
    dec = decoder_prev_hidden[0]                          # (B, H)
    enc = encoder_annotations

    # Pad S to a multiple of 8 so the in-kernel collapse is layout-free;
    # padded positions are masked in the softmax.
    S_pad = ((S + 7) // 8) * 8
    if S_pad != S:
        enc = jnp.pad(enc, ((0, 0), (0, S_pad - S), (0, 0)))

    enc_bf = enc.astype(jnp.bfloat16)
    dec_bf = dec.astype(jnp.bfloat16)
    wt = W_w.T.astype(jnp.bfloat16)                       # (H, H)
    ut = U_w.T.astype(jnp.bfloat16)                       # (2H, H)
    bias = (W_b + U_b).reshape(1, H).astype(jnp.float32)  # fused bias (f32)
    v_row = V_w.reshape(1, H).astype(jnp.float32)         # (1, H)  VPU path, keep f32
    del V_b  # scalar bias on pre-softmax scores: no effect (shift invariance)

    if bt is None:
        bt = _pick_bt(B, S_pad)
    grid = (pl.cdiv(B, bt),)

    kernel = functools.partial(_attention_context_kernel, seq_len=S)

    out = pl.pallas_call(
        kernel,
        out_shape=jax.ShapeDtypeStruct((B, H2), jnp.float32),
        grid_spec=pltpu.PrefetchScalarGridSpec(
            num_scalar_prefetch=0,
            grid=grid,
            in_specs=[
                pl.BlockSpec((bt, S_pad, H2), lambda b: (b, 0, 0)),  # enc (bf16)
                pl.BlockSpec((bt, H), lambda b: (b, 0)),             # dec (bf16)
                pl.BlockSpec((H, H), lambda b: (0, 0)),              # W^T (bf16)
                pl.BlockSpec((H2, H), lambda b: (0, 0)),             # U^T (bf16)
                pl.BlockSpec((1, H), lambda b: (0, 0)),              # W_b+U_b (f32)
                pl.BlockSpec((1, H), lambda b: (0, 0)),              # V row (f32)
            ],
            out_specs=pl.BlockSpec((bt, H2), lambda b: (b, 0)),
        ),
        compiler_params=pltpu.CompilerParams(
            dimension_semantics=("parallel",),
            vmem_limit_bytes=64 * 1024 * 1024),
    )(enc_bf, dec_bf, wt, ut, bias, v_row)

    return out.reshape(B, 1, H2)


def init_params(key, hidden_size):
    """Deterministic init mimicking nn.Linear shapes: weight (out, in), bias (out,)."""
    ks = jax.random.split(key, 6)

    def lin(kw, kb, out_f, in_f):
        bound = 1.0 / jnp.sqrt(in_f)
        w = jax.random.uniform(kw, (out_f, in_f), jnp.float32, -bound, bound)
        b = jax.random.uniform(kb, (out_f,), jnp.float32, -bound, bound)
        return w, b

    W_w, W_b = lin(ks[0], ks[1], hidden_size, hidden_size)
    U_w, U_b = lin(ks[2], ks[3], hidden_size, hidden_size * 2)
    V_w, V_b = lin(ks[4], ks[5], 1, hidden_size)
    return (W_w, W_b, U_w, U_b, V_w, V_b)


def attention_context_forward_ref(encoder_annotations, decoder_prev_hidden, params):
    """Pure-JAX f32 reference matching the PyTorch forward."""
    W_w, W_b, U_w, U_b, V_w, V_b = params
    dec = jnp.transpose(decoder_prev_hidden, (1, 0, 2))              # (B, 1, H)
    out = dec @ W_w.T + W_b + (encoder_annotations @ U_w.T + U_b)    # (B, S, H)
    out = jnp.tanh(out)
    scores = out @ V_w.T + V_b                                       # (B, S, 1)
    scores = jnp.transpose(scores, (0, 2, 1))                        # (B, 1, S)
    weights = jax.nn.softmax(scores, axis=2)
    return jnp.einsum("bqs,bsd->bqd", weights, encoder_annotations)  # (B, 1, 2H)


if __name__ == "__main__":
    hidden = 32
    batch = 2
    seq = 8

    key = jax.random.PRNGKey(0)
    k_enc, k_dec, k_par = jax.random.split(key, 3)

    encoder_annotations = jax.random.normal(k_enc, (batch, seq, hidden * 2), jnp.float32)
    decoder_prev_hidden = jax.random.normal(k_dec, (1, batch, hidden), jnp.float32)
    params = init_params(k_par, hidden)

    ctx = attention_context_forward(encoder_annotations, decoder_prev_hidden, params)
    ctx = jax.block_until_ready(ctx)

    ref = attention_context_forward_ref(encoder_annotations, decoder_prev_hidden, params)
    assert ctx.shape == (batch, 1, hidden * 2)
    # bf16 on the streamed matmul path -> looser tolerance vs the f32 reference.
    err = jnp.max(jnp.abs(ctx - ref))
    assert jnp.allclose(ctx, ref, atol=3e-2, rtol=3e-2), f"max abs err = {err}"

    print("KERNEL_OK")
</pallas_src>

<mosaic_0001>
module attributes {stable_mosaic.version = 11 : i64} {
  func.func @_attention_context_kernel(%arg0: i32, %arg1: memref<2x8x64xbf16, #tpu.memory_space<vmem>>, %arg2: memref<2x32xbf16, #tpu.memory_space<vmem>>, %arg3: memref<32x32xbf16, #tpu.memory_space<vmem>>, %arg4: memref<64x32xbf16, #tpu.memory_space<vmem>>, %arg5: memref<1x32xf32, #tpu.memory_space<vmem>>, %arg6: memref<1x32xf32, #tpu.memory_space<vmem>>, %arg7: memref<2x64xf32, #tpu.memory_space<vmem>>) attributes {dimension_semantics = [#tpu.dimension_semantics<parallel>], iteration_bounds = array<i64: 1>, scalar_prefetch = 0 : i64, scratch_operands = 0 : i64, tpu.core_type = #tpu.core_type<tc>, window_params = [{transform_indices = @transform_0, window_bounds = array<i64: 2, 8, 64>}, {transform_indices = @transform_1, window_bounds = array<i64: 2, 32>}, {pipeline_mode = #tpu.pipeline_mode<synchronous>, transform_indices = @transform_2, window_bounds = array<i64: 32, 32>}, {pipeline_mode = #tpu.pipeline_mode<synchronous>, transform_indices = @transform_3, window_bounds = array<i64: 64, 32>}, {pipeline_mode = #tpu.pipeline_mode<synchronous>, transform_indices = @transform_4, window_bounds = array<i64: 1, 32>}, {pipeline_mode = #tpu.pipeline_mode<synchronous>, transform_indices = @transform_5, window_bounds = array<i64: 1, 32>}, {transform_indices = @transform_6, window_bounds = array<i64: 2, 64>}]} {
    %c0 = arith.constant 0 : index
    %c0_0 = arith.constant 0 : index
    %c0_1 = arith.constant 0 : index
    %0 = vector.load %arg1[%c0, %c0_0, %c0_1] : memref<2x8x64xbf16, #tpu.memory_space<vmem>>, vector<2x8x64xbf16>
    %c0_2 = arith.constant 0 : index
    %c0_3 = arith.constant 0 : index
    %1 = vector.load %arg2[%c0_2, %c0_3] : memref<2x32xbf16, #tpu.memory_space<vmem>>, vector<2x32xbf16>
    %2 = vector.shape_cast %0 : vector<2x8x64xbf16> to vector<16x64xbf16>
    %c0_4 = arith.constant 0 : index
    %c0_5 = arith.constant 0 : index
    %3 = vector.load %arg4[%c0_4, %c0_5] : memref<64x32xbf16, #tpu.memory_space<vmem>>, vector<64x32xbf16>
    %cst = arith.constant dense<0.000000e+00> : vector<16x32xf32>
    %4 = tpu.matmul %2, %3, %cst {dimension_numbers = #tpu.dot_dimension_numbers<[1], [0], [0], [1], [0, 0, 1, 1], [], []>} : vector<16x64xbf16>, vector<64x32xbf16>, vector<16x32xf32> -> vector<16x32xf32>
    %5 = vector.shape_cast %4 : vector<16x32xf32> to vector<2x8x32xf32>
    %c0_6 = arith.constant 0 : index
    %c0_7 = arith.constant 0 : index
    %6 = vector.load %arg3[%c0_6, %c0_7] : memref<32x32xbf16, #tpu.memory_space<vmem>>, vector<32x32xbf16>
    %cst_8 = arith.constant dense<0.000000e+00> : vector<2x32xf32>
    %7 = tpu.matmul %1, %6, %cst_8 {dimension_numbers = #tpu.dot_dimension_numbers<[1], [0], [0], [1], [0, 0, 1, 1], [], []>} : vector<2x32xbf16>, vector<32x32xbf16>, vector<2x32xf32> -> vector<2x32xf32>
    %c0_9 = arith.constant 0 : index
    %c0_10 = arith.constant 0 : index
    %8 = vector.load %arg5[%c0_9, %c0_10] : memref<1x32xf32, #tpu.memory_space<vmem>>, vector<1x32xf32>
    %9 = vector.broadcast %8 : vector<1x32xf32> to vector<2x32xf32>
    %10 = arith.addf %7, %9 : vector<2x32xf32>
    %11 = vector.shape_cast %10 : vector<2x32xf32> to vector<2x1x32xf32>
    %12 = vector.broadcast %11 : vector<2x1x32xf32> to vector<2x8x32xf32>
    %13 = arith.addf %5, %12 : vector<2x8x32xf32>
    %14 = math.tanh %13 : vector<2x8x32xf32>
    %c0_11 = arith.constant 0 : index
    %c0_12 = arith.constant 0 : index
    %15 = vector.load %arg6[%c0_11, %c0_12] : memref<1x32xf32, #tpu.memory_space<vmem>>, vector<1x32xf32>
    %16 = vector.shape_cast %15 : vector<1x32xf32> to vector<1x1x32xf32>
    %17 = vector.broadcast %16 : vector<1x1x32xf32> to vector<2x8x32xf32>
    %18 = arith.mulf %14, %17 : vector<2x8x32xf32>
    %cst_13 = arith.constant dense<0.000000e+00> : vector<2x8xf32>
    %19 = vector.multi_reduction <add>, %18, %cst_13 [2] : vector<2x8x32xf32> to vector<2x8xf32>
    %cst_14 = arith.constant dense<0xFF800000> : vector<2xf32>
    %20 = vector.multi_reduction <maximumf>, %19, %cst_14 [1] : vector<2x8xf32> to vector<2xf32>
    %21 = vector.shape_cast %20 : vector<2xf32> to vector<2x1xf32>
    %22 = vector.broadcast %21 : vector<2x1xf32> to vector<2x8xf32>
    %23 = arith.subf %19, %22 : vector<2x8xf32>
    %24 = math.exp %23 : vector<2x8xf32>
    %cst_15 = arith.constant dense<0.000000e+00> : vector<2xf32>
    %25 = vector.multi_reduction <add>, %24, %cst_15 [1] : vector<2x8xf32> to vector<2xf32>
    %26 = vector.shape_cast %25 : vector<2xf32> to vector<2x1xf32>
    %27 = tpu.reciprocal %26 {approx = true} : vector<2x1xf32> -> vector<2x1xf32>
    %28 = vector.broadcast %27 : vector<2x1xf32> to vector<2x8xf32>
    %29 = arith.mulf %24, %28 : vector<2x8xf32>
    %30 = vector.shape_cast %29 : vector<2x8xf32> to vector<2x8x1xf32>
    %31 = arith.extf %0 : vector<2x8x64xbf16> to vector<2x8x64xf32>
    %32 = vector.broadcast %30 : vector<2x8x1xf32> to vector<2x8x64xf32>
    %33 = arith.mulf %32, %31 : vector<2x8x64xf32>
    %cst_16 = arith.constant dense<0.000000e+00> : vector<2x64xf32>
    %34 = vector.multi_reduction <add>, %33, %cst_16 [1] : vector<2x8x64xf32> to vector<2x64xf32>
    %c0_17 = arith.constant 0 : index
    %c0_18 = arith.constant 0 : index
    %35 = vector.load %arg7[%c0_17, %c0_18] : memref<2x64xf32, #tpu.memory_space<vmem>>, vector<2x64xf32>
    tpu.vector_store %arg7[%c0_17, %c0_18], %34 {strides = array<i32>} : memref<2x64xf32, #tpu.memory_space<vmem>>, vector<2x64xf32>,
    return
  }
  func.func @transform_0(%arg0: i32) -> (i32, i32, i32) {
    %c0_i32 = arith.constant 0 : i32
    %c0_i32_0 = arith.constant 0 : i32
    %c0_i32_1 = arith.constant 0 : i32
    return %arg0, %c0_i32, %c0_i32_0 : i32, i32, i32
  }
  func.func @transform_1(%arg0: i32) -> (i32, i32) {
    %c0_i32 = arith.constant 0 : i32
    %c0_i32_0 = arith.constant 0 : i32
    return %arg0, %c0_i32 : i32, i32
  }
  func.func @transform_2(%arg0: i32) -> (i32, i32) {
    %c0_i32 = arith.constant 0 : i32
    %c0_i32_0 = arith.constant 0 : i32
    %c0_i32_1 = arith.constant 0 : i32
    return %c0_i32, %c0_i32_0 : i32, i32
  }
  func.func @transform_3(%arg0: i32) -> (i32, i32) {
    %c0_i32 = arith.constant 0 : i32
    %c0_i32_0 = arith.constant 0 : i32
    %c0_i32_1 = arith.constant 0 : i32
    return %c0_i32, %c0_i32_0 : i32, i32
  }
  func.func @transform_4(%arg0: i32) -> (i32, i32) {
    %c0_i32 = arith.constant 0 : i32
    %c0_i32_0 = arith.constant 0 : i32
    %c0_i32_1 = arith.constant 0 : i32
    return %c0_i32, %c0_i32_0 : i32, i32
  }
  func.func @transform_5(%arg0: i32) -> (i32, i32) {
    %c0_i32 = arith.constant 0 : i32
    %c0_i32_0 = arith.constant 0 : i32
    %c0_i32_1 = arith.constant 0 : i32
    return %c0_i32, %c0_i32_0 : i32, i32
  }
  func.func @transform_6(%arg0: i32) -> (i32, i32) {
    %c0_i32 = arith.constant 0 : i32
    %c0_i32_0 = arith.constant 0 : i32
    return %arg0, %c0_i32 : i32, i32
  }
}

</mosaic_0001>

<bundles_post_ra>
// kernel: attention_context_forward.1
= control target key start
LH: loop header
LB: loop body
LE: loop exit
PB: predicated region body
PF: predicated region fallthrough
CT: control target
= control target key end

     0   :  { %11 = vsyncpa [#allocation3], 0  ;;  %s833_s0 = inlined_call_operand.hbm [shape: bf16[2,8,64], index: 0, kind: input, shape index: {}]   ;;  %s834_s1 = inlined_call_operand.hbm [shape: bf16[2,32], index: 1, kind: input, shape index: {}]   ;;  %s835_s2 = inlined_call_operand.hbm [shape: bf16[32,32], index: 2, kind: input, shape index: {}]   ;;  %s836_s3 = inlined_call_operand.hbm [shape: bf16[64,32], index: 3, kind: input, shape index: {}]   ;;  %s837_s4 = inlined_call_operand.hbm [shape: f32[1,32], index: 4, kind: input, shape index: {}]   ;;  %s838_s5 = inlined_call_operand.hbm [shape: f32[1,32], index: 5, kind: input, shape index: {}]   ;;  %s839_s6 = inlined_call_operand.hbm [shape: f32[2,64], index: 6, kind: output, shape index: {}]  }
   0x1   :  { %12 = vsyncpa [#allocation6], 0 }
   0x2   :  { %13 = vsyncpa [#allocation9], 0 }
   0x3   :  { %14 = vsyncpa [#allocation12], 0 }
   0x4   :  { %15 = vsyncpa [#allocation4], 0  ;;  %s664_s21 = smov [#allocation5]   ;;  %s500_s25 = scalar_lea.hbm %s834_s1, 16 }
   0x5   :  { %s34_s22 = sshll.u32 %s664_s21, 4  ;;  %p501_p0 = scmp.ne.s32.totalorder %s834_s1, %s500_s25  ;;  %s35_s22 = int_to_ptr.vmem [resolvable:$true] %s34_s22 }
   0x6   :  { %p504_p1 = scmp.lt.u32.totalorder %s500_s25, %s834_s1 }
   0x8   :  { %p506_p2 = pnand %p504_p1, %p501_p0 }
   0xa   :  { %509 = shalt.err (!%p506_p2)
}
   0xb   :  { %s510_s30 = scalar_lea.vmem %s35_s22, 16  ;;  %s514_s7 = scalar_lea.vmem %s35_s22, 32 }
   0xc   :  { %p511_p3 = scmp.ne.s32.totalorder %s35_s22, %s510_s30  ;;  %p515_p4 = scmp.lt.s32.totalorder %s35_s22, %s35_s22 }
   0xd   :  { %p516_p5 = scmp.lt.s32.totalorder %s514_s7, %s510_s30 }
   0xf   :  { %p517_p6 = por %p516_p5, %p515_p4 }
  0x11   :  { %p518_p7 = pnand %p517_p6, %p511_p3 }
  0x13   :  { %521 = shalt.err (!%p518_p7)
}
  0x14   :  { %37 = dma.hbm_to_vmem [thread:$0]  %s834_s1, 16, %s35_s22, [#allocation6]  }
  0x15   :  { %s665_s10 = smov [#allocation8]   ;;  %s666_s12 = smov [#allocation2]  }
  0x16   :  { %s55_s11 = sshll.u32 %s665_s10, 4  ;;  %s21_s13 = sshll.u32 %s666_s12, 4  ;;  %s56_s11 = int_to_ptr.vmem [resolvable:$true] %s55_s11  ;;  %s22_s13 = int_to_ptr.vmem [resolvable:$true] %s21_s13 }
  0x17   :  { %s522_s16 = scalar_lea.hbm %s836_s3, 512 }
  0x18   :  { %p523_p8 = scmp.ne.s32.totalorder %s836_s3, %s522_s16  ;;  %p526_p9 = scmp.lt.u32.totalorder %s522_s16, %s836_s3 }
  0x1a   :  { %p528_p10 = pnand %p526_p9, %p523_p8 }
  0x1c   :  { %531 = shalt.err (!%p528_p10)
}
  0x1d   :  { %s532_s1 = scalar_lea.vmem %s56_s11, 512  ;;  %p537_p12 = scmp.lt.s32.totalorder %s56_s11, %s56_s11 }
  0x1e   :  { %p533_p11 = scmp.ne.s32.totalorder %s56_s11, %s532_s1  ;;  %p538_p13 = scmp.lt.s32.totalorder %s532_s1, %s532_s1 }
  0x20   :  { %p539_p0 = por %p538_p13, %p537_p12 }
  0x22   :  { %p540_p1 = pnand %p539_p0, %p533_p11 }
  0x24   :  { %543 = shalt.err (!%p540_p1)
}
  0x25   :  { %s667_s21 = smov 64   ;;  %s668_s22 = smov 4  }
  0x26   :  { %61 = dma.hbm_to_vmem [thread:$0]  %s836_s3, 512, %s56_s11, [#allocation9], %s667_s21, %s667_s21, %s668_s22  }
  0x27   :  { %s544_s27 = scalar_lea.hbm %s833_s0, 128 }
  0x28   :  { %p545_p2 = scmp.ne.s32.totalorder %s833_s0, %s544_s27  ;;  %p548_p3 = scmp.lt.u32.totalorder %s544_s27, %s833_s0 }
  0x2a   :  { %p550_p4 = pnand %p548_p3, %p545_p2 }
  0x2c   :  { %553 = shalt.err (!%p550_p4)
}
  0x2d   :  { %s554_s8 = scalar_lea.vmem %s22_s13, 128  ;;  %p559_p6 = scmp.lt.s32.totalorder %s22_s13, %s22_s13 }
  0x2e   :  { %p555_p5 = scmp.ne.s32.totalorder %s22_s13, %s554_s8  ;;  %p560_p7 = scmp.lt.s32.totalorder %s554_s8, %s554_s8 }
  0x30   :  { %p561_p8 = por %p560_p7, %p559_p6 }
  0x32   :  { %p562_p9 = pnand %p561_p8, %p555_p5 }
  0x34   :  { %565 = shalt.err (!%p562_p9)
}
  0x35   :  { %27 = dma.hbm_to_vmem [thread:$0]  %s833_s0, 128, %s22_s13, [#allocation3], %s667_s21, %s667_s21, %s668_s22  }
  0x36   :  { %s669_s10 = smov [#allocation7]   ;;  %s670_s12 = smov [#allocation10]  }
  0x37   :  { %s43_s11 = sshll.u32 %s669_s10, 4  ;;  %s68_s14 = sshll.u32 %s670_s12, 4  ;;  %s44_s11 = int_to_ptr.vmem [resolvable:$true] %s43_s11  ;;  %s69_s14 = int_to_ptr.vmem [resolvable:$true] %s68_s14 }
  0x38   :  { %s566_s17 = scalar_lea.hbm %s835_s2, 256 }
  0x39   :  { %p567_p10 = scmp.ne.s32.totalorder %s835_s2, %s566_s17  ;;  %p570_p11 = scmp.lt.u32.totalorder %s566_s17, %s835_s2 }
  0x3b   :  { %p572_p12 = pnand %p570_p11, %p567_p10 }
  0x3d   :  { %575 = shalt.err (!%p572_p12)
}
  0x3e   :  { %s576_s0 = scalar_lea.vmem %s44_s11, 256  ;;  %p581_p0 = scmp.lt.s32.totalorder %s44_s11, %s44_s11 }
  0x3f   :  { %p577_p13 = scmp.ne.s32.totalorder %s44_s11, %s576_s0  ;;  %p582_p1 = scmp.lt.s32.totalorder %s576_s0, %s576_s0 }
  0x41   :  { %p583_p2 = por %p582_p1, %p581_p0 }
  0x43   :  { %p584_p3 = pnand %p583_p2, %p577_p13 }
  0x45   :  { %587 = shalt.err (!%p584_p3)
}
  0x46   :  { %49 = dma.hbm_to_vmem [thread:$0]  %s835_s2, 256, %s44_s11, [#allocation6], %s667_s21, %s667_s21, %s668_s22  }
  0x47   :  { %s588_s26 = scalar_lea.hbm %s837_s4, 16 }
  0x48   :  { %p589_p4 = scmp.ne.s32.totalorder %s837_s4, %s588_s26  ;;  %p592_p5 = scmp.lt.u32.totalorder %s588_s26, %s837_s4 }
  0x4a   :  { %p594_p6 = pnand %p592_p5, %p589_p4 }
  0x4c   :  { %597 = shalt.err (!%p594_p6)
}
  0x4d   :  { %s598_s7 = scalar_lea.vmem %s69_s14, 16  ;;  %s602_s8 = scalar_lea.vmem %s69_s14, 32 }
  0x4e   :  { %p599_p7 = scmp.ne.s32.totalorder %s69_s14, %s598_s7  ;;  %p603_p8 = scmp.lt.s32.totalorder %s69_s14, %s69_s14 }
  0x4f   :  { %p604_p9 = scmp.lt.s32.totalorder %s602_s8, %s598_s7 }
  0x51   :  { %p605_p10 = por %p604_p9, %p603_p8 }
  0x53   :  { %p606_p11 = pnand %p605_p10, %p599_p7 }
  0x55   :  { %609 = shalt.err (!%p606_p11)
}
  0x56   :  { %71 = dma.hbm_to_vmem [thread:$0]  %s837_s4, 16, %s69_s14, [#allocation9]  }
  0x57   :  { %s671_s22 = smov [#allocation11]   ;;  %s610_s11 = scalar_lea.hbm %s838_s5, 16 }
  0x58   :  { %s78_s3 = sshll.u32 %s671_s22, 4  ;;  %p611_p12 = scmp.ne.s32.totalorder %s838_s5, %s610_s11  ;;  %s79_s3 = int_to_ptr.vmem [resolvable:$true] %s78_s3 }
  0x59   :  { %p614_p13 = scmp.lt.u32.totalorder %s610_s11, %s838_s5 }
  0x5b   :  { %p616_p0 = pnand %p614_p13, %p611_p12 }
  0x5d   :  { %619 = shalt.err (!%p616_p0)
}
  0x5e   :  { %s620_s18 = scalar_lea.vmem %s79_s3, 16  ;;  %s624_s4 = scalar_lea.vmem %s79_s3, 32 }
  0x5f   :  { %p621_p1 = scmp.ne.s32.totalorder %s79_s3, %s620_s18  ;;  %p625_p2 = scmp.lt.s32.totalorder %s79_s3, %s79_s3 }
  0x60   :  { %p626_p3 = scmp.lt.s32.totalorder %s624_s4, %s620_s18 }
  0x62   :  { %p627_p4 = por %p626_p3, %p625_p2 }
  0x64   :  { %p628_p5 = pnand %p627_p4, %p621_p1 }
  0x66   :  { %631 = shalt.err (!%p628_p5)
}
  0x67   :  { %81 = dma.hbm_to_vmem [thread:$0]  %s838_s5, 16, %s79_s3, [#allocation12]  }
  0x68   :  { %654 = dma.done.wait [#allocation3], 128  }
  0x69   :  { %655 = vsyncadd [#allocation3], 4294967168 }
  0x6a   :  { %656 = dma.done.wait [#allocation6], 272  }
  0x6b   :  { %657 = vsyncadd [#allocation6], 4294967024 }
  0x6c   :  { %658 = dma.done.wait [#allocation9], 528  }
  0x6d   :  { %659 = vsyncadd [#allocation9], 4294966768 }
  0x6e   :  { %660 = dma.done.wait [#allocation12], 16  }
  0x6f   :  { %661 = vsyncadd [#allocation12], 4294967280  ;;  %v672_v0 = vmov 0.0   ;;  %vm673_vm0 = vmmov 0   ;;  %v482_v1 = vld [vmem:[#allocation8] sm:$0xff]   ;;  %v483_v2 = vld [vmem:[#allocation7] sm:$0xff]   ;;  %v257_v11 = vlaneseq }
  0x70   :  { %447 = vmatprep.subr.bf16.mxu0 %v672_v0  ;;  %459 = vmatprep.subr.bf16.mxu1 %v672_v0  ;;  %v484_v3 = vld [vmem:[#allocation8 + $0x8] sm:$0xff]   ;;  %v485_v4 = vld [vmem:[#allocation7 + $0x8] sm:$0xff]   ;;  %v486_v5 = vld [vmem:[#allocation8 + $0x10] sm:$0xff]   ;;  %vm209_vm1 = vcmask 261120   ;;  %vm141_vm2 = vcmask 523264   ;;  %vm317_vm3 = vcmask 1041409  }
  0x71   :  { %463 = vmatprep.mubr.msk.bf16.mxu1 %vm673_vm0, %v672_v0  ;;  %455 = vmatprep.mubr.msk.bf16.mxu0 %vm673_vm0, %v672_v0  ;;  %v103_v6 = vld [vmem:[#allocation5] sm:$0x1]  ;;  %v487_v7 = vld [vmem:[#allocation8 + $0x18] sm:$0xff]   ;;  %v794_v8 = vld [vmem:[#allocation2] sm:$0xff]   ;;  %v674_v9 = vmov 1966171168  }
  0x72   :  { %448 = vmatpush3.bf16.msra.mxu0 %v482_v1  ;;  %460 = vmatpush3.bf16.msra.mxu1 %v483_v2  ;;  %v255_v10 = vunpack.c.l.s4 %v674_v9  ;;  %v798_v13 = vshrl.u32 %v257_v11, 7  ;;  %v434_v14 = vld [vmem:[#allocation10] ss:$0 sm:$0xff]  ;;  %v438_v34 = vld [vmem:[#allocation11] ss:$0 sm:$0xff]  ;;  %v308_v41 = vand.u32 127, %v257_v11  ;;  %v376_v9 = vunpack.c.l.bf16 %v794_v8 }
  0x73   :  { %449 = vmatprep.subr.bf16.mxu0 %v672_v0  ;;  %461 = vmatprep.subr.bf16.mxu1 %v672_v0  ;;  %vm320_vm4 = vcmask 58368   ;;  %v675_v49 = vmov 0   ;;  %s676_s5 = smov [#allocation13]   ;;  %vm408_vm5 = vcmask 517120  }
  0x74   :  { %v256_v12 = vunpack.c.0.s8 %v255_v10  ;;  %v802_v22 = vsub.s32 0, %v798_v13  ;;  %v311_v43 = vsub.s32 %v308_v41, %v798_v13  ;;  %481 = vset.pattern.permute.xlu0 %v675_v49  ;;  %480 = vset.pattern.permute.xlu1 %v675_v49  ;;  %v331_v50 = vsub.s32 1, %v798_v13  ;;  %s416_s20 = sshll.u32 %s676_s5, 4  ;;  %s417_s20 = int_to_ptr.vmem [resolvable:$true] %s416_s20 }
  0x75   :  { %s632_s1 = scalar_lea.vmem %s417_s20, 32  ;;  %p637_p7 = scmp.lt.s32.totalorder %s417_s20, %s417_s20 }
  0x76   :  { %450 = vmatpush3.bf16.msra.mxu0 %v484_v3  ;;  %462 = vmatpush3.bf16.msra.mxu1 %v485_v4  ;;  %v259_v15 = vsub.s32 %v256_v12, %v798_v13  ;;  %v377_v12 = vunpack.c.h.bf16 %v794_v8  ;;  %p633_p6 = scmp.ne.s32.totalorder %s417_s20, %s632_s1  ;;  %p638_p8 = scmp.lt.s32.totalorder %s632_s1, %s632_s1 }
  0x77   :  { %451 = vmatprep.subr.bf16.mxu0 %v672_v0 }
  0x78   :  { %p639_p9 = por %p638_p8, %p637_p7 }
  0x79   :  { %464 = vmatmul.mubr.msk.bf16.vlgmr.msra.gmra.mrb[0].mxu1 %vm209_vm1, %v103_v6 }
  0x7a   :  { %452 = vmatpush3.bf16.msra.mxu0 %v486_v5  ;;  %p640_p10 = pnand %p639_p9, %p633_p6 }
  0x7b   :  { %453 = vmatprep.subr.bf16.mxu0 %v672_v0 }
  0x7e   :  { %454 = vmatpush3.bf16.msra.mxu0 %v487_v7 }
  0x81   :  { %456 = vmatmul.mubr.msk.bf16.vlgmr.msra.gmra.mrb[0].mxu0 %vm141_vm2, %v794_v8 }
 0x14c   :  { %v247_v16 = vpop.f32.mrb[0].mxu1 }
 0x14d   :  { %v248_v17 = vadd.f32 %v434_v14, %v247_v16  ;;  %v465_v18 = vpop.f32.mrb[1].mxu1 }
 0x14e   :  { %v250_v19 = vpop.f32.mrb[2].mxu1 }
 0x14f   :  { %v260_v20 = vrot.slane %v248_v17, %v259_v15  ;;  %v466_v21 = vpop.f32.mrb[3].mxu1 }
 0x151   :  { %v261_v23 = vcombine.high %v260_v20, %v260_v20  ;;  %v268_v24 = vrot.slane %v260_v20, %v259_v15 }
 0x153   :  { %v279_v26 = vrot.slane %v268_v24, %v802_v22  ;;  %v275_v27 = vrot.slane %v261_v23, %v259_v15 }
 0x154   :  { %v179_v25 = vpop.f32.mrb[0].mxu0 }
 0x155   :  { %v457_v28 = vpop.f32.mrb[1].mxu0  ;;  %v286_v29 = vadd.f32 %v279_v26, %v179_v25  ;;  %v283_v31 = vrot.slane %v275_v27, %v802_v22 }
 0x156   :  { %v182_v30 = vpop.f32.mrb[2].mxu0 }
 0x157   :  { %v458_v32 = vpop.f32.mrb[3].mxu0  ;;  %490 = vtanh.f32 %v286_v29  ;;  %v287_v33 = vadd.f32 %v283_v31, %v182_v30 }
 0x159   :  { %492 = vtanh.f32 %v287_v33 }
 0x161   :  { %v491_v35 = vpop.eup %490 }
 0x162   :  { %v297_v36 = vmul.f32 %v491_v35, %v438_v34 }
 0x163   :  { %v493_v37 = vpop.eup %492 }
 0x164   :  { %v299_v38 = vsel %vm209_vm1, %v297_v36, 0.0  ;;  %v298_v39 = vmul.f32 %v493_v37, %v438_v34 }
 0x165   :  { %300 = vadd.xlane.f32.xlu0 %v299_v38 }
 0x166   :  { %v302_v40 = vsel %vm209_vm1, %v298_v39, 0.0 }
 0x169   :  { %303 = vadd.xlane.f32.xlu0 %v302_v40 }
 0x1f2   :  { %v301_v42 = vpop.xlane.xlu0 %300 }
 0x1f3   :  { %v312_v45 = vrot.slane %v301_v42, %v311_v43 }
 0x1f6   :  { %v304_v44 = vpop.xlane.xlu0 %303 }
 0x1f7   :  { %v316_v46 = vrot.slane %v304_v44, %v311_v43 }
 0x1f9   :  { %v318_v47 = vsel %vm317_vm3, %v316_v46, %v312_v45 }
 0x1fa   :  { %v321_v48 = vsel %vm320_vm4, %v318_v47, -inf }
 0x1fb   :  { %322 = vmax.xlane.f32.xlu1 %v321_v48 }
 0x288   :  { %v323_v51 = vpop.xlane.xlu1 %322 }
 0x289   :  { %v328_v52 = vrot.slane %v323_v51, %v802_v22  ;;  %v332_v53 = vrot.slane %v323_v51, %v331_v50 }
 0x28b   :  { %v335_v54 = vsub.f32 %v301_v42, %v328_v52  ;;  %v336_v55 = vsub.f32 %v304_v44, %v332_v53 }
 0x28d   :  { %v337_v56 = vmul.f32 1.442695, %v335_v54  ;;  %v339_v57 = vmul.f32 1.442695, %v336_v55 }
 0x28f   :  { %494 = vpow2.f32 %v337_v56 }
 0x290   :  { %496 = vpow2.f32 %v339_v57 }
 0x299   :  { %v495_v58 = vpop.eup %494 }
 0x29a   :  { %v497_v59 = vpop.eup %496  ;;  %344 = vperm.xlu1 %480, %v495_v58  }
 0x29b   :  { %347 = vperm.xlu0 %481, %v497_v59  }
 0x319   :  { %v345_v60 = vpop.permute.xlu1 %344 }
 0x31a   :  { %v348_v61 = vpop.permute.xlu0 %347  ;;  %v352_v62 = vrot.slane %v345_v60, %v311_v43 }
 0x31b   :  { %v356_v63 = vrot.slane %v348_v61, %v311_v43 }
 0x31d   :  { %v357_v0 = vsel %vm317_vm3, %v356_v63, %v352_v62 }
 0x31e   :  { %v359_v1 = vsel %vm320_vm4, %v357_v0, 0.0 }
 0x31f   :  { %360 = vadd.xlane.f32.xlu1 %v359_v1 }
 0x3ac   :  { %v361_v2 = vpop.xlane.xlu1 %360 }
 0x3ad   :  { %498 = vrcp.f32 %v361_v2 }
 0x3b7   :  { %v499_v3 = vpop.eup %498 }
 0x3b8   :  { %v367_v4 = vrot.slane %v499_v3, %v802_v22  ;;  %v371_v6 = vrot.slane %v499_v3, %v331_v50 }
 0x3ba   :  { %v374_v5 = vmul.f32 %v495_v58, %v367_v4  ;;  %v375_v7 = vmul.f32 %v497_v59, %v371_v6 }
 0x3bc   :  { %380 = vperm.xlu0 %481, %v374_v5  }
 0x3c0   :  { %385 = vperm.xlu0 %481, %v375_v7  }
 0x43b   :  { %v381_v10 = vpop.permute.xlu0 %380 }
 0x43c   :  { %v388_v11 = vmul.f32 %v381_v10, %v376_v9 }
 0x43e   :  { %v390_v13 = vsel %vm141_vm2, %v388_v11, 0.0 }
 0x43f   :  { %v391_v14 = vrot.slane %v390_v13, 4  ;;  %v386_v15 = vpop.permute.xlu0 %385 }
 0x440   :  { %v389_v16 = vmul.f32 %v386_v15, %v377_v12 }
 0x441   :  { %v392_v17 = vadd.f32 %v391_v14, %v390_v13 }
 0x442   :  { %v397_v18 = vsel %vm141_vm2, %v389_v16, 0.0 }
 0x443   :  { %v393_v19 = vrot.slane %v392_v17, 2  ;;  %v398_v20 = vrot.slane %v397_v18, 4 }
 0x445   :  { %v394_v21 = vadd.f32 %v393_v19, %v392_v17  ;;  %v399_v22 = vadd.f32 %v398_v20, %v397_v18 }
 0x447   :  { %v400_v23 = vrot.slane %v399_v22, 2  ;;  %v395_v24 = vrot.slane %v394_v21, 1 }
 0x449   :  { %v401_v25 = vadd.f32 %v400_v23, %v399_v22  ;;  %v396_v27 = vadd.f32 %v395_v24, %v394_v21 }
 0x44b   :  { %v402_v26 = vrot.slane %v401_v25, 1 }
 0x44d   :  { %v403_v8 = vadd.f32 %v402_v26, %v401_v25 }
 0x44f   :  { %v406_v28 = vsel %vm317_vm3, %v403_v8, %v396_v27 }
 0x450   :  { %409 = vst.msk [vmem:[#allocation13] sm:$0x3] %vm408_vm5, %v406_v28 }
 0x451   :  { %643 = shalt.err (!%p640_p10)
}
 0x452   :  { %s644_s23 = scalar_lea.hbm %s839_s6, 32 }
 0x453   :  { %p645_p11 = scmp.ne.s32.totalorder %s839_s6, %s644_s23  ;;  %p648_p12 = scmp.lt.u32.totalorder %s644_s23, %s839_s6 }
 0x455   :  { %p650_p13 = pnand %p648_p12, %p645_p11 }
 0x457   :  { %653 = shalt.err (!%p650_p13)
}
 0x458   :  { %419 = dma.vmem_to_hbm [thread:$0]  %s417_s20, 32, %s839_s6, [#allocation4]  }
 0x459   :  { %662 = dma.done.wait [#allocation4], 32  }
 0x45a   :  { %663 = vsyncadd [#allocation4], 4294967264 }
 0x45b   :  { %423 = vsyncpa [#allocation3], 1 }
 0x45c   :  { %424 = vsyncpa [#allocation6], 1 }
 0x45d   :  { %425 = vsyncpa [#allocation9], 1 }
 0x45e   :  { %426 = vsyncpa [#allocation12], 1 }
 0x45f   :  { %427 = vsyncpa [#allocation4], 1 }

</bundles_post_ra>
